<compile_context>
chip_gen: v5e
topology: v5e:2x2
jax: 0.10.0
libtpu: 0.0.40
codegen_flags: <defaults>
</compile_context>

<pallas_src>
import math

import jax
import jax.numpy as jnp
from jax.experimental import pallas as pl
from jax.experimental.pallas import tpu as pltpu

IN_FEATURES = 2
OUT_FEATURES = 2
LANE = 128
DEFAULT_BLOCK_ROWS = 2048        # (2048, 128) f32 block = 1 MiB per stream per step
SMALL_M_THRESHOLD = 32768        # below this many rows, einsum beats any pallas_call


def _round_up(n, m):
    return ((n + m - 1) // m) * m


def _default_core_parallel():
    """Enable CORE_PARALLEL only when the chip looks like a 2-TensorCore v7 part."""
    try:
        kind = jax.devices()[0].device_kind.lower()
    except Exception:
        return False
    return "v7" in kind or "7x" in kind


def _linear_kernel(w_ref, b_ref, x_ref, o_ref):
    """VPU/XLU-only Linear(2, 2) on an interleaved lane-dense tile.

    w_ref: SMEM (4,)  = [w00, w01, w10, w11]   (row-major nn.Linear weight)
    b_ref: SMEM (2,)  = [b0, b1]
    x_ref: VMEM (R, 128) -- row-major flattened input; even lane = x0, odd lane = x1
    o_ref: VMEM (R, 128) -- same interleaved layout: even lane = y0, odd lane = y1
    """
    # Per-lane parity patterns (one vreg; broadcast against the (R, 128) block).
    lane = jax.lax.broadcasted_iota(jnp.int32, (1, LANE), 1)
    even = (lane & 1) == 0
    w0 = jnp.where(even, w_ref[0], w_ref[2])   # weight multiplying x0 for this output lane
    w1 = jnp.where(even, w_ref[1], w_ref[3])   # weight multiplying x1 for this output lane
    bb = jnp.where(even, b_ref[0], b_ref[1])   # bias for this output lane

    x = x_ref[...].astype(jnp.float32)                    # (R, 128)
    # Neighbour exchange on the XLU: bring the paired feature onto every lane.
    right = pltpu.roll(x, shift=1, axis=1)                # right[i] = x[i-1]
    left = pltpu.roll(x, shift=LANE - 1, axis=1)          # left[i]  = x[i+1]  (shift = -1 mod 128)
    x0 = jnp.where(even, x, right)                        # feature 0 on both lanes of each pair
    x1 = jnp.where(even, left, x)                         # feature 1 on both lanes of each pair

    # y[even] = w00*x0 + w01*x1 + b0 ; y[odd] = w10*x0 + w11*x1 + b1  -- pure VPU FMAs.
    o_ref[...] = (x0 * w0 + x1 * w1 + bb).astype(o_ref.dtype)


def linear_pallas(x, weight, bias, *,
                  block_rows=DEFAULT_BLOCK_ROWS,
                  min_rows_for_kernel=SMALL_M_THRESHOLD,
                  core_parallel=None):
    """y = x @ weight.T + bias over the last axis of x (PyTorch nn.Linear semantics)."""
    orig_shape = x.shape
    assert orig_shape[-1] == IN_FEATURES
    m = math.prod(orig_shape[:-1]) if len(orig_shape) > 1 else 1

    # Small-M dispatch: launch overhead dwarfs 8 FLOPs/row; plain einsum is faster.
    if m < min_rows_for_kernel:
        return (jnp.einsum("...i,oi->...o", x, weight) + bias).astype(x.dtype)

    # Row-major flatten keeps features interleaved on lanes: x0,x1,x0,x1,...  (free reshape).
    flat = x.reshape(-1)
    total = flat.shape[0]                      # 2 * m
    padded = _round_up(total, LANE)            # pad only to one 128-lane row, never to a tile
    if padded != total:
        flat = jnp.pad(flat, (0, padded - total))
    nr = padded // LANE
    xr = flat.reshape(nr, LANE)                # free, contiguous reshape

    # Block row count: multiple of 8 when tiling, or the full extent for small inputs.
    bm = nr if nr <= block_rows else block_rows
    grid = (pl.cdiv(nr, bm),)                  # ragged last block handled by Pallas masking

    # Flattened parameters as 32-bit scalars in SMEM.
    w_flat = weight.reshape(-1).astype(jnp.float32)  # (4,)
    b_flat = bias.reshape(-1).astype(jnp.float32)    # (2,)

    if core_parallel is None:
        core_parallel = _default_core_parallel()
    semantics = (pltpu.CORE_PARALLEL,) if core_parallel else ("parallel",)

    itemsize = jnp.dtype(x.dtype).itemsize
    cost = pl.CostEstimate(
        flops=8 * m,                                   # 4 mul + 4 add per row
        transcendentals=0,
        bytes_accessed=2 * padded * itemsize + 6 * 4,  # stream in + stream out + params
    )

    out = pl.pallas_call(
        _linear_kernel,
        out_shape=jax.ShapeDtypeStruct((nr, LANE), x.dtype),
        grid=grid,
        in_specs=[
            pl.BlockSpec(memory_space=pltpu.MemorySpace.SMEM),   # weight scalars
            pl.BlockSpec(memory_space=pltpu.MemorySpace.SMEM),   # bias scalars
            pl.BlockSpec((bm, LANE), lambda i: (i, 0)),          # input tile (lane+sublane dense)
        ],
        out_specs=pl.BlockSpec((bm, LANE), lambda i: (i, 0)),    # output tile, same layout
        compiler_params=pltpu.CompilerParams(
            dimension_semantics=semantics,
            vmem_limit_bytes=32 * 1024 * 1024,   # headroom for f32 temporaries; safe on v5e-v7x
        ),
        cost_estimate=cost,
    )(w_flat, b_flat, xr)

    flat_out = out.reshape(-1)
    if padded != total:
        flat_out = flat_out[:total]            # drop pad lanes (keep this slice: pad rows = bias)
    return flat_out.reshape(*orig_shape[:-1], OUT_FEATURES)


if __name__ == "__main__":
    key = jax.random.PRNGKey(0)
    kx, kw, kb, kx2, kx3 = jax.random.split(key, 5)

    # Deterministic synthetic parameters with nn.Linear(2, 2) shapes.
    weight = jax.random.uniform(kw, (OUT_FEATURES, IN_FEATURES), jnp.float32,
                                minval=-0.7071, maxval=0.7071)
    bias = jax.random.uniform(kb, (OUT_FEATURES,), jnp.float32,
                              minval=-0.7071, maxval=0.7071)

    def ref(v):
        return jnp.einsum("...i,oi->...o", v, weight) + bias

    # Case 1: small multi-dimensional input (the module's use case); force the kernel path.
    x1 = jax.random.normal(kx, (2, 4, IN_FEATURES), jnp.float32)
    y1 = linear_pallas(x1, weight, bias, min_rows_for_kernel=0)
    jax.block_until_ready(y1)
    assert y1.shape == (2, 4, OUT_FEATURES)
    assert jnp.allclose(y1, ref(x1), atol=1e-5, rtol=1e-5)

    # Case 2: 2*M not a multiple of 128 -> exercises the tail pad/slice path.
    x2 = jax.random.normal(kx2, (4, 700, IN_FEATURES), jnp.float32)
    y2 = linear_pallas(x2, weight, bias, min_rows_for_kernel=0)
    jax.block_until_ready(y2)
    assert y2.shape == (4, 700, OUT_FEATURES)
    assert jnp.allclose(y2, ref(x2), atol=1e-5, rtol=1e-5)

    # Case 3: 2*M a multiple of 128 with a multi-step grid -> zero-copy wrapper path.
    x3 = jax.random.normal(kx3, (8, 2048, IN_FEATURES), jnp.float32)
    y3 = linear_pallas(x3, weight, bias, min_rows_for_kernel=0, block_rows=128)
    jax.block_until_ready(y3)
    assert y3.shape == (8, 2048, OUT_FEATURES)
    assert jnp.allclose(y3, ref(x3), atol=1e-5, rtol=1e-5)

    # Case 4: default small-M einsum dispatch still matches.
    y4 = linear_pallas(x1, weight, bias)
    jax.block_until_ready(y4)
    assert jnp.allclose(y4, ref(x1), atol=1e-5, rtol=1e-5)

    print("KERNEL_OK")
</pallas_src>

<mosaic_0001>
module attributes {stable_mosaic.version = 11 : i64} {
  func.func @_linear_kernel(%arg0: i32, %arg1: memref<4xf32, #tpu.memory_space<smem>>, %arg2: memref<2xf32, #tpu.memory_space<smem>>, %arg3: memref<1x128xf32, #tpu.memory_space<vmem>>, %arg4: memref<1x128xf32, #tpu.memory_space<vmem>>) attributes {dimension_semantics = [#tpu.dimension_semantics<parallel>], iteration_bounds = array<i64: 1>, scalar_prefetch = 0 : i64, scratch_operands = 0 : i64, tpu.core_type = #tpu.core_type<tc>, window_params = [{transform_indices = @transform_0, window_bounds = array<i64: 4>}, {transform_indices = @transform_1, window_bounds = array<i64: 2>}, {transform_indices = @transform_2, window_bounds = array<i64: 1, 128>}, {transform_indices = @transform_3, window_bounds = array<i64: 1, 128>}]} {
    %0 = tpu.iota {dimensions = array<i32: 1>} : vector<1x128xi32>
    %c1_i32 = arith.constant 1 : i32
    %1 = vector.broadcast %c1_i32 : i32 to vector<1x128xi32>
    %2 = arith.andi %0, %1 : vector<1x128xi32>
    %c0_i32 = arith.constant 0 : i32
    %3 = vector.broadcast %c0_i32 : i32 to vector<1x128xi32>
    %4 = arith.cmpi eq, %2, %3 : vector<1x128xi32>
    %c0 = arith.constant 0 : index
    %5 = memref.load %arg1[%c0] : memref<4xf32, #tpu.memory_space<smem>>
    %c2 = arith.constant 2 : index
    %6 = memref.load %arg1[%c2] : memref<4xf32, #tpu.memory_space<smem>>
    %7 = vector.broadcast %5 : f32 to vector<1x128xf32>
    %8 = vector.broadcast %6 : f32 to vector<1x128xf32>
    %9 = arith.select %4, %7, %8 : vector<1x128xi1>, vector<1x128xf32>
    %c1 = arith.constant 1 : index
    %10 = memref.load %arg1[%c1] : memref<4xf32, #tpu.memory_space<smem>>
    %c3 = arith.constant 3 : index
    %11 = memref.load %arg1[%c3] : memref<4xf32, #tpu.memory_space<smem>>
    %12 = vector.broadcast %10 : f32 to vector<1x128xf32>
    %13 = vector.broadcast %11 : f32 to vector<1x128xf32>
    %14 = arith.select %4, %12, %13 : vector<1x128xi1>, vector<1x128xf32>
    %c0_0 = arith.constant 0 : index
    %15 = memref.load %arg2[%c0_0] : memref<2xf32, #tpu.memory_space<smem>>
    %c1_1 = arith.constant 1 : index
    %16 = memref.load %arg2[%c1_1] : memref<2xf32, #tpu.memory_space<smem>>
    %17 = vector.broadcast %15 : f32 to vector<1x128xf32>
    %18 = vector.broadcast %16 : f32 to vector<1x128xf32>
    %19 = arith.select %4, %17, %18 : vector<1x128xi1>, vector<1x128xf32>
    %c0_2 = arith.constant 0 : index
    %c0_3 = arith.constant 0 : index
    %20 = vector.load %arg3[%c0_2, %c0_3] : memref<1x128xf32, #tpu.memory_space<vmem>>, vector<1x128xf32>
    %c1_i32_4 = arith.constant 1 : i32
    %21 = tpu.dynamic_rotate %20 by %c1_i32_4 dim 1 : vector<1x128xf32>, i32 -> vector<1x128xf32>
    %c127_i32 = arith.constant 127 : i32
    %22 = tpu.dynamic_rotate %20 by %c127_i32 dim 1 : vector<1x128xf32>, i32 -> vector<1x128xf32>
    %23 = arith.select %4, %20, %21 : vector<1x128xi1>, vector<1x128xf32>
    %24 = arith.select %4, %22, %20 : vector<1x128xi1>, vector<1x128xf32>
    %25 = arith.mulf %23, %9 : vector<1x128xf32>
    %26 = arith.mulf %24, %14 : vector<1x128xf32>
    %27 = arith.addf %25, %26 : vector<1x128xf32>
    %28 = arith.addf %27, %19 : vector<1x128xf32>
    %c0_5 = arith.constant 0 : index
    %c0_6 = arith.constant 0 : index
    %29 = vector.load %arg4[%c0_5, %c0_6] : memref<1x128xf32, #tpu.memory_space<vmem>>, vector<1x128xf32>
    tpu.vector_store %arg4[%c0_5, %c0_6], %28 {strides = array<i32>} : memref<1x128xf32, #tpu.memory_space<vmem>>, vector<1x128xf32>,
    return
  }
  func.func @transform_0(%arg0: i32) -> i32 {
    %c0_i32 = arith.constant 0 : i32
    %c0_i32_0 = arith.constant 0 : i32
    return %c0_i32 : i32
  }
  func.func @transform_1(%arg0: i32) -> i32 {
    %c0_i32 = arith.constant 0 : i32
    %c0_i32_0 = arith.constant 0 : i32
    return %c0_i32 : i32
  }
  func.func @transform_2(%arg0: i32) -> (i32, i32) {
    %c0_i32 = arith.constant 0 : i32
    %c0_i32_0 = arith.constant 0 : i32
    return %arg0, %c0_i32 : i32, i32
  }
  func.func @transform_3(%arg0: i32) -> (i32, i32) {
    %c0_i32 = arith.constant 0 : i32
    %c0_i32_0 = arith.constant 0 : i32
    return %arg0, %c0_i32 : i32, i32
  }
}

</mosaic_0001>

<bundles_post_ra>
// kernel: tpu_custom_call.1
= control target key start
LH: loop header
LB: loop body
LE: loop exit
PB: predicated region body
PF: predicated region fallthrough
CT: control target
= control target key end

     0   :  { %8 = vsyncpa [#allocation4], 0  ;;  %s189_s0 = inlined_call_operand.hbm [shape: f32[4], index: 0, kind: input, shape index: {}]   ;;  %s190_s1 = inlined_call_operand.hbm [shape: f32[2], index: 1, kind: input, shape index: {}]   ;;  %s191_s2 = inlined_call_operand.vmem [shape: f32[1,128], index: 2, kind: input, shape index: {}]   ;;  %s192_s3 = inlined_call_operand.hbm [shape: f32[1,128], index: 3, kind: output, shape index: {}]  }
   0x1   :  { %9 = vsyncpa [#allocation6], 0 }
   0x2   :  { %10 = vsyncpa [#allocation3], 0  ;;  %s16_s14 = sshll.u32 %s189_s0, 4  ;;  %s25_s17 = sshll.u32 %s190_s1, 4  ;;  %s17_s14 = int_to_ptr.hbm [resolvable:$true] %s16_s14  ;;  %s26_s17 = int_to_ptr.hbm [resolvable:$true] %s25_s17 }
   0x3   :  { %s152_s18 = smov [#allocation2]   ;;  %s153_s19 = smov [#allocation5]  }
   0x4   :  { %19 = dma.hbm_to_smem %s17_s14, 16, %s152_s18, [#allocation4]  }
   0x5   :  { %28 = dma.hbm_to_smem %s26_s17, 16, %s153_s19, [#allocation6]  }
   0x6   :  { %146 = dma.done.wait [#allocation4], 16  }
   0x7   :  { %147 = vsyncadd [#allocation4], 4294967280 }
   0x8   :  { %148 = dma.done.wait [#allocation6], 16  }
   0x9   :  { %149 = vsyncadd [#allocation6], 4294967280 }
   0xa   :  { %39 = sfence }
   0xb   :  { %v59_v0 = vld [vmem:[%s191_s2] sm:$0x1]  ;;  %s154_s0 = smov 1   ;;  %s155_s22 = smov 127   ;;  %v40_v1 = vlaneseq }
   0xc   :  { %60 = vrot.lane.b32.xlu0 %v59_v0, %s154_s0  ;;  %s44_s1 = sld [smem:[#allocation2]]  ;;  %s156_s2 = smov [#allocation7]  }
   0xd   :  { %s89_s23 = sld [smem:[#allocation2 + $0x2]]  ;;  %v41_v2 = vand.u32 127, %v40_v1  ;;  %s76_s28 = sshll.u32 %s156_s2, 4  ;;  %s77_s28 = int_to_ptr.vmem [resolvable:$true] %s76_s28 }
   0xe   :  { %s90_s24 = sld [smem:[#allocation2 + $0x1]]  ;;  %s78_s4 = sshll.u32 %s192_s3, 4  ;;  %s79_s4 = int_to_ptr.hbm [resolvable:$true] %s78_s4 }
   0xf   :  { %s91_s25 = sld [smem:[#allocation2 + $0x3]]  ;;  %v42_v3 = vand.u32 1, %v41_v2 }
  0x10   :  { %s54_s26 = sld [smem:[#allocation5]] }
  0x11   :  { %s92_s27 = sld [smem:[#allocation5 + $0x1]]  ;;  %vm43_vm0 = vcmp.eq.s32.totalorder %v42_v3, 0 }
  0x12   :  { %v46_v5 = vstv %s44_s1 }
  0x13   :  { %v47_v6 = vstv %s89_s23 }
  0x14   :  { %62 = vrot.lane.b32.xlu0 %v59_v0, %s155_s22  ;;  %v51_v7 = vstv %s90_s24  ;;  %v48_v9 = vsel %vm43_vm0, %v46_v5, %v47_v6 }
  0x15   :  { %v52_v8 = vstv %s91_s25 }
  0x16   :  { %v53_v11 = vsel %vm43_vm0, %v51_v7, %v52_v8  ;;  %v56_v13 = vstv %s54_s26 }
  0x17   :  { %v57_v14 = vstv %s92_s27 }
  0x18   :  { %v58_v18 = vsel %vm43_vm0, %v56_v13, %v57_v14 }
  0x7e   :  { %v61_v4 = vpop.permute.xlu0 %60 }
  0x7f   :  { %v64_v10 = vsel %vm43_vm0, %v59_v0, %v61_v4 }
  0x80   :  { %v66_v16 = vmul.f32 %v64_v10, %v48_v9 }
  0x86   :  { %v63_v12 = vpop.permute.xlu0 %62 }
  0x87   :  { %v65_v15 = vsel %vm43_vm0, %v63_v12, %v59_v0 }
  0x88   :  { %v67_v17 = vmul.f32 %v65_v15, %v53_v11 }
  0x8a   :  { %v68_v19 = vadd.f32 %v67_v17, %v66_v16 }
  0x8c   :  { %v69_v20 = vadd.f32 %v68_v19, %v58_v18 }
  0x8e   :  { %70 = vst [vmem:[#allocation7] sm:$0x1] %v69_v20 }
  0x8f   :  { %81 = dma.vmem_to_hbm [thread:$0]  %s77_s28, 16, %s79_s4, [#allocation3]  }
  0x90   :  { %150 = dma.done.wait [#allocation3], 16  }
  0x91   :  { %151 = vsyncadd [#allocation3], 4294967280 }
  0x92   :  { %86 = vsyncpa [#allocation3], 1 }
  0x93   :  { %87 = vsyncpa [#allocation4], 1 }
  0x94   :  { %88 = vsyncpa [#allocation6], 1 }

</bundles_post_ra>
